<compile_context>
chip_gen: v6e
topology: v6e:2x2x1
jax: 0.10.0
libtpu: 0.0.40
codegen_flags: <defaults>
</compile_context>

<pallas_src>
import math
from functools import partial

import jax
import jax.numpy as jnp
from jax import lax
from jax.experimental import pallas as pl
from jax.experimental.pallas import tpu as pltpu


_NEG_INF = -1e30  # large finite negative: avoids inf-inf -> NaN corner cases


# --------------------------------------------------------------------------
# small helpers (run in f32 on the VPU/EUP)
# --------------------------------------------------------------------------
def _layernorm_f32(x, gamma, beta, eps=1e-5):
    x = x.astype(jnp.float32)
    mu = jnp.mean(x, axis=-1, keepdims=True)
    xc = x - mu
    var = jnp.mean(xc * xc, axis=-1, keepdims=True)
    return xc * lax.rsqrt(var + eps) * gamma + beta


def _gelu_tanh_f32(x):
    c = math.sqrt(2.0 / math.pi)
    return 0.5 * x * (1.0 + jnp.tanh(c * (x + 0.044715 * x * x * x)))


def _pick_seq_tile(t, preferred):
    if t <= preferred:
        return t
    for cand in range(preferred, 7, -8):
        if t % cand == 0:
            return cand
    return t


def _pick_hidden_tile(f, preferred=1024):
    if f <= preferred:
        return f
    for cand in range(preferred, 127, -128):
        if f % cand == 0:
            return cand
    return f


def _vmem_limit(block_costs):
    """block_costs: iterable of (block_shape, dtype, buffer_count)."""
    total = sum(math.prod(s) * jnp.dtype(d).itemsize * n for s, d, n in block_costs)
    total = int(total * 1.5) + (4 << 20)          # headroom for compiler temps
    # cap at 64 MiB so the requested budget is legal on v7x as well as v5e/v6e
    return int(min(max(total, 32 << 20), 64 << 20))


def _supports_pipeline_mode():
    try:
        pl.BlockSpec((8, 128), lambda i: (0, 0), pipeline_mode=pl.Buffered(1))
        return True
    except Exception:
        return False


def _const_spec(shape, single_buffer):
    """BlockSpec for a grid-invariant operand (weights / biases / LN params)."""
    index_map = lambda *_: (0,) * len(shape)
    if single_buffer:
        # one VMEM copy instead of double-buffering a block that never changes
        return pl.BlockSpec(shape, index_map, pipeline_mode=pl.Buffered(1))
    return pl.BlockSpec(shape, index_map)


# --------------------------------------------------------------------------
# Kernel 1: ln_1 + fused QKV projection          (one (tq, C) token tile/step)
# --------------------------------------------------------------------------
def _ln_qkv_kernel(x_ref, g_ref, b_ref, w_ref, bias_ref, qkv_ref):
    x = x_ref[0]                                          # (tq, C) f32
    h = _layernorm_f32(x, g_ref[0], b_ref[0])             # f32 statistics
    qkv = jnp.dot(h.astype(jnp.bfloat16), w_ref[...],     # bf16 x bf16 -> f32
                  preferred_element_type=jnp.float32)
    qkv = qkv + bias_ref[...]                             # (1, 3C) broadcasts
    qkv_ref[0] = qkv.astype(qkv_ref.dtype)


# --------------------------------------------------------------------------
# Kernel 2: flash-style causal attention (online softmax over KV tiles)
# --------------------------------------------------------------------------
def _flash_attn_kernel(q_ref, k_ref, v_ref, o_ref, m_sc, l_sc, acc_sc,
                       *, tq, tkv):
    i = pl.program_id(2)          # query tile index
    j = pl.program_id(3)          # kv tile index (innermost, "arbitrary")
    nk = pl.num_programs(3)

    @pl.when(j == 0)
    def _init():
        m_sc[...] = jnp.full_like(m_sc, _NEG_INF)
        l_sc[...] = jnp.zeros_like(l_sc)
        acc_sc[...] = jnp.zeros_like(acc_sc)

    # Skip KV tiles that lie entirely above the causal diagonal.
    @pl.when(j * tkv <= i * tq + (tq - 1))
    def _update():
        q = q_ref[0, 0]           # (tq, hd)  bf16 (1/sqrt(hd) already folded)
        k = k_ref[0, 0]           # (tkv, hd) bf16
        v = v_ref[0, 0]           # (tkv, hd) bf16
        # contract on the last axes -> no explicit k.T transpose
        s = lax.dot_general(q, k, (((1,), (1,)), ((), ())),
                            preferred_element_type=jnp.float32)   # (tq, tkv)
        row = i * tq + lax.broadcasted_iota(jnp.int32, (tq, tkv), 0)
        col = j * tkv + lax.broadcasted_iota(jnp.int32, (tq, tkv), 1)
        s = jnp.where(col <= row, s, _NEG_INF)

        m_prev = m_sc[...]
        m_new = jnp.maximum(m_prev, jnp.max(s, axis=-1, keepdims=True))
        alpha = jnp.exp(m_prev - m_new)
        p = jnp.exp(s - m_new)
        l_sc[...] = alpha * l_sc[...] + jnp.sum(p, axis=-1, keepdims=True)
        acc_sc[...] = alpha * acc_sc[...] + jnp.dot(
            p.astype(v.dtype), v, preferred_element_type=jnp.float32)
        m_sc[...] = m_new

    @pl.when(j == nk - 1)
    def _finalize():
        inv_l = pl.reciprocal(l_sc[...], approx=True)     # EUP slot, off VALU
        o_ref[0, 0] = (acc_sc[...] * inv_l).astype(o_ref.dtype)


# --------------------------------------------------------------------------
# Kernel 3: attn out-proj + residual + ln_2 + MLP + residual
# --------------------------------------------------------------------------
def _proj_mlp_kernel(x_ref, y_ref, wpa_ref, bpa_ref, g2_ref, b2_ref,
                     wfc_ref, bfc_ref, wpm_ref, bpm_ref, o_ref,
                     *, hidden_tile):
    x = x_ref[0]                                          # (tq, C) f32 residual
    y = y_ref[0]                                          # (tq, C) bf16 attn out
    # attention output projection + first residual (f32 accumulation)
    x = x + jnp.dot(y, wpa_ref[...], preferred_element_type=jnp.float32) \
          + bpa_ref[...]
    # second LayerNorm in f32; cast to bf16 only at the MXU boundary
    h2 = _layernorm_f32(x, g2_ref[0], b2_ref[0]).astype(jnp.bfloat16)

    # MLP with the 4C hidden dimension processed in chunks so the live
    # intermediate is (tq, hidden_tile), never (tq, 4C).
    ffn = wfc_ref.shape[1]
    acc = jnp.zeros(x.shape, jnp.float32)
    for c in range(ffn // hidden_tile):                   # static, small count
        sl = pl.ds(c * hidden_tile, hidden_tile)
        hfc = jnp.dot(h2, wfc_ref[:, sl],
                      preferred_element_type=jnp.float32) + bfc_ref[:, sl]
        hfc = _gelu_tanh_f32(hfc).astype(jnp.bfloat16)    # gelu in f32
        acc = acc + jnp.dot(hfc, wpm_ref[sl, :],
                            preferred_element_type=jnp.float32)
    o_ref[0] = x + acc + bpm_ref[...]                     # second residual


# --------------------------------------------------------------------------
# wrapper
# --------------------------------------------------------------------------
def _gpt2_block_impl(x, params, n_head, *, q_tile=None, attn_tile=None,
                     mlp_hidden_tile=None, single_buffer=True):
    B, T, C = x.shape
    assert C % n_head == 0
    H, hd = n_head, C // n_head
    f32, bf16 = jnp.float32, jnp.bfloat16

    tq = q_tile or _pick_seq_tile(T, 256)           # token tile for K1/K3
    ta = attn_tile or _pick_seq_tile(T, 512)        # q/kv tile for attention
    hidden_tile = mlp_hidden_tile or _pick_hidden_tile(4 * C)
    assert T % tq == 0 and T % ta == 0 and (4 * C) % hidden_tile == 0
    nbuf_w = 1 if single_buffer else 2

    # ---- parameter prep (host side, cheap) ----
    scale = 1.0 / math.sqrt(hd)
    w_attn = params["w_attn"].astype(f32)
    b_attn = params["b_attn"].astype(f32)
    # fold the 1/sqrt(hd) attention scale into the q columns of the QKV proj
    w_attn = jnp.concatenate([w_attn[:, :C] * scale, w_attn[:, C:]], axis=1)
    b_attn = jnp.concatenate([b_attn[:C] * scale, b_attn[C:]], axis=0)

    wq = w_attn.astype(bf16)                        # (C, 3C)
    wpa = params["w_proj_a"].astype(bf16)           # (C, C)
    wfc = params["w_fc"].astype(bf16)               # (C, 4C)
    wpm = params["w_proj_m"].astype(bf16)           # (4C, C)

    row = lambda v: v.reshape(1, -1).astype(f32)
    ln1_g, ln1_b = row(params["ln1_g"]), row(params["ln1_b"])
    ln2_g, ln2_b = row(params["ln2_g"]), row(params["ln2_b"])
    b_attn = row(b_attn)
    bpa, bfc, bpm = (row(params["b_proj_a"]), row(params["b_fc"]),
                     row(params["b_proj_m"]))

    # -------------------- kernel 1: ln_1 + QKV --------------------
    k1_vmem = _vmem_limit([((1, tq, C), f32, 2),
                           ((1, tq, 3 * C), bf16, 2),
                           ((C, 3 * C), bf16, nbuf_w),
                           ((1, tq, 3 * C), f32, 1)])
    qkv = pl.pallas_call(
        _ln_qkv_kernel,
        out_shape=jax.ShapeDtypeStruct((B, T, 3 * C), bf16),
        grid_spec=pltpu.PrefetchScalarGridSpec(
            num_scalar_prefetch=0,
            grid=(B, T // tq),
            in_specs=[
                pl.BlockSpec((1, tq, C), lambda b, i: (b, i, 0)),
                _const_spec((1, C), single_buffer),
                _const_spec((1, C), single_buffer),
                _const_spec((C, 3 * C), single_buffer),
                _const_spec((1, 3 * C), single_buffer),
            ],
            out_specs=pl.BlockSpec((1, tq, 3 * C), lambda b, i: (b, i, 0)),
        ),
        compiler_params=pltpu.CompilerParams(
            dimension_semantics=("parallel", "parallel"),
            vmem_limit_bytes=k1_vmem),
    )(x, ln1_g, ln1_b, wq, b_attn)

    # head split (layout shuffle left to XLA; fuses with the surrounding copy)
    q, k, v = qkv[..., :C], qkv[..., C:2 * C], qkv[..., 2 * C:]
    to_heads = lambda t: t.reshape(B, T, H, hd).transpose(0, 2, 1, 3)
    q, k, v = to_heads(q), to_heads(k), to_heads(v)       # (B, H, T, hd) bf16

    # -------------------- kernel 2: flash attention --------------------
    nq = nk = T // ta
    qspec = pl.BlockSpec((1, 1, ta, hd), lambda b, h, i, j: (b, h, i, 0))
    kvspec = pl.BlockSpec((1, 1, ta, hd), lambda b, h, i, j: (b, h, j, 0))
    k2_vmem = _vmem_limit([((1, 1, ta, hd), bf16, 8),     # q, k, v, out blocks
                           ((ta, ta), f32, 3),            # scores / probs temps
                           ((ta, hd), f32, 2),            # accumulator scratch
                           ((ta, 1), f32, 4)])
    y = pl.pallas_call(
        partial(_flash_attn_kernel, tq=ta, tkv=ta),
        out_shape=jax.ShapeDtypeStruct((B, H, T, hd), bf16),
        grid_spec=pltpu.PrefetchScalarGridSpec(
            num_scalar_prefetch=0,
            grid=(B, H, nq, nk),
            in_specs=[qspec, kvspec, kvspec],
            out_specs=pl.BlockSpec((1, 1, ta, hd),
                                   lambda b, h, i, j: (b, h, i, 0)),
            scratch_shapes=[pltpu.VMEM((ta, 1), f32),
                            pltpu.VMEM((ta, 1), f32),
                            pltpu.VMEM((ta, hd), f32)],
        ),
        compiler_params=pltpu.CompilerParams(
            dimension_semantics=("parallel", "parallel", "parallel",
                                 "arbitrary"),
            vmem_limit_bytes=k2_vmem),
    )(q, k, v)

    y = y.transpose(0, 2, 1, 3).reshape(B, T, C)          # back to (B, T, C)

    # ------- kernel 3: out-proj + residual + ln_2 + MLP + residual -------
    k3_vmem = _vmem_limit([((1, tq, C), f32, 4),          # x in + out
                           ((1, tq, C), bf16, 2),         # attention output
                           ((C, C), bf16, nbuf_w),
                           ((C, 4 * C), bf16, nbuf_w),
                           ((4 * C, C), bf16, nbuf_w),
                           ((tq, hidden_tile), f32, 2),   # live hfc chunk
                           ((tq, C), f32, 2)])            # h2 / accumulator
    out = pl.pallas_call(
        partial(_proj_mlp_kernel, hidden_tile=hidden_tile),
        out_shape=jax.ShapeDtypeStruct((B, T, C), f32),
        grid_spec=pltpu.PrefetchScalarGridSpec(
            num_scalar_prefetch=0,
            grid=(B, T // tq),
            in_specs=[
                pl.BlockSpec((1, tq, C), lambda b, i: (b, i, 0)),   # x
                pl.BlockSpec((1, tq, C), lambda b, i: (b, i, 0)),   # attn out
                _const_spec((C, C), single_buffer),                 # w_proj_a
                _const_spec((1, C), single_buffer),                 # b_proj_a
                _const_spec((1, C), single_buffer),                 # ln2 gamma
                _const_spec((1, C), single_buffer),                 # ln2 beta
                _const_spec((C, 4 * C), single_buffer),             # w_fc
                _const_spec((1, 4 * C), single_buffer),             # b_fc
                _const_spec((4 * C, C), single_buffer),             # w_proj_m
                _const_spec((1, C), single_buffer),                 # b_proj_m
            ],
            out_specs=pl.BlockSpec((1, tq, C), lambda b, i: (b, i, 0)),
        ),
        compiler_params=pltpu.CompilerParams(
            dimension_semantics=("parallel", "parallel"),
            vmem_limit_bytes=k3_vmem),
    )(x, y, wpa, bpa, ln2_g, ln2_b, wfc, bfc, wpm, bpm)
    return out


def gpt2_block(x, params, n_head, **kwargs):
    """GPT-2 Block forward. Uses single-buffered (pl.Buffered(1)) weight
    blocks when supported; falls back to default double-buffering if the
    installed JAX/Pallas rejects BlockSpec.pipeline_mode (at construction or
    at lowering time)."""
    if _supports_pipeline_mode():
        try:
            return _gpt2_block_impl(x, params, n_head, single_buffer=True,
                                    **kwargs)
        except Exception:
            pass
    return _gpt2_block_impl(x, params, n_head, single_buffer=False, **kwargs)


# --------------------------------------------------------------------------
# pure-JAX reference (f32) for correctness checking
# --------------------------------------------------------------------------
def ref_block(x, params, n_head):
    B, T, C = x.shape
    hd = C // n_head

    def ln(v, g, b):
        mu = v.mean(-1, keepdims=True)
        var = ((v - mu) ** 2).mean(-1, keepdims=True)
        return (v - mu) / jnp.sqrt(var + 1e-5) * g + b

    h = ln(x, params["ln1_g"], params["ln1_b"])
    qkv = h @ params["w_attn"] + params["b_attn"]
    q, k, v = jnp.split(qkv, 3, axis=-1)
    q = q.reshape(B, T, n_head, hd).transpose(0, 2, 1, 3)
    k = k.reshape(B, T, n_head, hd).transpose(0, 2, 1, 3)
    v = v.reshape(B, T, n_head, hd).transpose(0, 2, 1, 3)
    s = jnp.einsum("bhtd,bhsd->bhts", q, k) / math.sqrt(hd)
    mask = jnp.tril(jnp.ones((T, T), bool))
    s = jnp.where(mask, s, -jnp.inf)
    p = jax.nn.softmax(s, axis=-1)
    y = jnp.einsum("bhts,bhsd->bhtd", p, v)
    y = y.transpose(0, 2, 1, 3).reshape(B, T, C)
    y = y @ params["w_proj_a"] + params["b_proj_a"]
    x = x + y
    h2 = ln(x, params["ln2_g"], params["ln2_b"])
    hfc = h2 @ params["w_fc"] + params["b_fc"]
    c = math.sqrt(2.0 / math.pi)
    hfc = 0.5 * hfc * (1.0 + jnp.tanh(c * (hfc + 0.044715 * hfc ** 3)))
    return x + hfc @ params["w_proj_m"] + params["b_proj_m"]


if __name__ == "__main__":
    def make_params(key, C):
        ks = jax.random.split(key, 8)
        return {
            "ln1_g": jnp.ones((C,), jnp.float32),
            "ln1_b": jnp.zeros((C,), jnp.float32),
            "w_attn": 0.02 * jax.random.normal(ks[0], (C, 3 * C), jnp.float32),
            "b_attn": 0.02 * jax.random.normal(ks[1], (3 * C,), jnp.float32),
            "w_proj_a": 0.02 * jax.random.normal(ks[2], (C, C), jnp.float32),
            "b_proj_a": 0.02 * jax.random.normal(ks[3], (C,), jnp.float32),
            "ln2_g": jnp.ones((C,), jnp.float32),
            "ln2_b": jnp.zeros((C,), jnp.float32),
            "w_fc": 0.02 * jax.random.normal(ks[4], (C, 4 * C), jnp.float32),
            "b_fc": 0.02 * jax.random.normal(ks[5], (4 * C,), jnp.float32),
            "w_proj_m": 0.02 * jax.random.normal(ks[6], (4 * C, C), jnp.float32),
            "b_proj_m": 0.02 * jax.random.normal(ks[7], (C,), jnp.float32),
        }

    root = jax.random.PRNGKey(0)
    k_p1, k_x1, k_p2, k_x2 = jax.random.split(root, 4)

    # config 1: matches the toy module sizes (n_embd=32, n_head=4, T=8, B=2)
    B1, T1, C1, H1 = 2, 8, 32, 4
    params1 = make_params(k_p1, C1)
    x1 = jax.random.normal(k_x1, (B1, T1, C1), jnp.float32)
    out1 = jax.block_until_ready(gpt2_block(x1, params1, n_head=H1))
    ref1 = jax.block_until_ready(ref_block(x1, params1, H1))
    assert out1.shape == (B1, T1, C1)
    err1 = float(jnp.max(jnp.abs(out1 - ref1)))
    assert err1 < 1e-2, f"config-1 mismatch vs reference: {err1}"

    # config 2: exercises the tiled paths (multiple q/kv tiles, causal KV-tile
    # skipping, multi-chunk MLP hidden dimension)
    B2, T2, C2, H2 = 2, 64, 64, 4
    params2 = make_params(k_p2, C2)
    x2 = jax.random.normal(k_x2, (B2, T2, C2), jnp.float32)
    out2 = jax.block_until_ready(
        gpt2_block(x2, params2, n_head=H2,
                   q_tile=16, attn_tile=16, mlp_hidden_tile=128))
    ref2 = jax.block_until_ready(ref_block(x2, params2, H2))
    err2 = float(jnp.max(jnp.abs(out2 - ref2)))
    assert err2 < 1e-2, f"config-2 mismatch vs reference: {err2}"

    print("KERNEL_OK")
</pallas_src>

<mosaic_0001>
module attributes {stable_mosaic.version = 11 : i64} {
  func.func @_ln_qkv_kernel(%arg0: i32, %arg1: i32, %arg2: memref<1x8x32xf32, #tpu.memory_space<vmem>>, %arg3: memref<1x32xf32, #tpu.memory_space<vmem>>, %arg4: memref<1x32xf32, #tpu.memory_space<vmem>>, %arg5: memref<32x96xbf16, #tpu.memory_space<vmem>>, %arg6: memref<1x96xf32, #tpu.memory_space<vmem>>, %arg7: memref<1x8x96xbf16, #tpu.memory_space<vmem>>) attributes {dimension_semantics = [#tpu.dimension_semantics<parallel>, #tpu.dimension_semantics<parallel>], iteration_bounds = array<i64: 2, 1>, scalar_prefetch = 0 : i64, scratch_operands = 0 : i64, tpu.core_type = #tpu.core_type<tc>, window_params = [{transform_indices = @transform_0, window_bounds = array<i64: 1, 8, 32>}, {pipeline_mode = #tpu.pipeline_mode<synchronous>, transform_indices = @transform_1, window_bounds = array<i64: 1, 32>}, {pipeline_mode = #tpu.pipeline_mode<synchronous>, transform_indices = @transform_2, window_bounds = array<i64: 1, 32>}, {pipeline_mode = #tpu.pipeline_mode<synchronous>, transform_indices = @transform_3, window_bounds = array<i64: 32, 96>}, {pipeline_mode = #tpu.pipeline_mode<synchronous>, transform_indices = @transform_4, window_bounds = array<i64: 1, 96>}, {transform_indices = @transform_5, window_bounds = array<i64: 1, 8, 96>}]} {
    %c0 = arith.constant 0 : index
    %c0_0 = arith.constant 0 : index
    %c0_1 = arith.constant 0 : index
    %0 = vector.load %arg2[%c0, %c0_0, %c0_1] : memref<1x8x32xf32, #tpu.memory_space<vmem>>, vector<1x8x32xf32>
    %1 = vector.shape_cast %0 : vector<1x8x32xf32> to vector<8x32xf32>
    %c0_2 = arith.constant 0 : index
    %c0_3 = arith.constant 0 : index
    %2 = vector.load %arg3[%c0_2, %c0_3] : memref<1x32xf32, #tpu.memory_space<vmem>>, vector<1x32xf32>
    %3 = vector.shape_cast %2 : vector<1x32xf32> to vector<32xf32>
    %c0_4 = arith.constant 0 : index
    %c0_5 = arith.constant 0 : index
    %4 = vector.load %arg4[%c0_4, %c0_5] : memref<1x32xf32, #tpu.memory_space<vmem>>, vector<1x32xf32>
    %5 = vector.shape_cast %4 : vector<1x32xf32> to vector<32xf32>
    %cst = arith.constant dense<0.000000e+00> : vector<8xf32>
    %6 = vector.multi_reduction <add>, %1, %cst [1] : vector<8x32xf32> to vector<8xf32>
    %7 = vector.shape_cast %6 : vector<8xf32> to vector<8x1xf32>
    %cst_6 = arith.constant 3.200000e+01 : f32
    %8 = vector.broadcast %cst_6 : f32 to vector<8x1xf32>
    %9 = arith.divf %7, %8 : vector<8x1xf32>
    %10 = vector.broadcast %9 : vector<8x1xf32> to vector<8x32xf32>
    %11 = arith.subf %1, %10 : vector<8x32xf32>
    %12 = arith.mulf %11, %11 : vector<8x32xf32>
    %cst_7 = arith.constant dense<0.000000e+00> : vector<8xf32>
    %13 = vector.multi_reduction <add>, %12, %cst_7 [1] : vector<8x32xf32> to vector<8xf32>
    %14 = vector.shape_cast %13 : vector<8xf32> to vector<8x1xf32>
    %cst_8 = arith.constant 3.200000e+01 : f32
    %15 = vector.broadcast %cst_8 : f32 to vector<8x1xf32>
    %16 = arith.divf %14, %15 : vector<8x1xf32>
    %cst_9 = arith.constant 9.99999974E-6 : f32
    %17 = vector.broadcast %cst_9 : f32 to vector<8x1xf32>
    %18 = arith.addf %16, %17 : vector<8x1xf32>
    %19 = math.rsqrt %18 : vector<8x1xf32>
    %20 = vector.broadcast %19 : vector<8x1xf32> to vector<8x32xf32>
    %21 = arith.mulf %11, %20 : vector<8x32xf32>
    %22 = vector.shape_cast %3 : vector<32xf32> to vector<1x32xf32>
    %23 = vector.broadcast %22 : vector<1x32xf32> to vector<8x32xf32>
    %24 = arith.mulf %21, %23 : vector<8x32xf32>
    %25 = vector.shape_cast %5 : vector<32xf32> to vector<1x32xf32>
    %26 = vector.broadcast %25 : vector<1x32xf32> to vector<8x32xf32>
    %27 = arith.addf %24, %26 : vector<8x32xf32>
    %28 = arith.truncf %27 : vector<8x32xf32> to vector<8x32xbf16>
    %c0_10 = arith.constant 0 : index
    %c0_11 = arith.constant 0 : index
    %29 = vector.load %arg5[%c0_10, %c0_11] : memref<32x96xbf16, #tpu.memory_space<vmem>>, vector<32x96xbf16>
    %cst_12 = arith.constant dense<0.000000e+00> : vector<8x96xf32>
    %30 = tpu.matmul %28, %29, %cst_12 {dimension_numbers = #tpu.dot_dimension_numbers<[1], [0], [0], [1], [0, 0, 1, 1], [], []>} : vector<8x32xbf16>, vector<32x96xbf16>, vector<8x96xf32> -> vector<8x96xf32>
    %c0_13 = arith.constant 0 : index
    %c0_14 = arith.constant 0 : index
    %31 = vector.load %arg6[%c0_13, %c0_14] : memref<1x96xf32, #tpu.memory_space<vmem>>, vector<1x96xf32>
    %32 = vector.broadcast %31 : vector<1x96xf32> to vector<8x96xf32>
    %33 = arith.addf %30, %32 : vector<8x96xf32>
    %34 = arith.truncf %33 : vector<8x96xf32> to vector<8x96xbf16>
    %c0_15 = arith.constant 0 : index
    %c0_16 = arith.constant 0 : index
    %c0_17 = arith.constant 0 : index
    %35 = vector.load %arg7[%c0_15, %c0_16, %c0_17] : memref<1x8x96xbf16, #tpu.memory_space<vmem>>, vector<1x8x96xbf16>
    %36 = vector.shape_cast %35 : vector<1x8x96xbf16> to vector<8x96xbf16>
    %37 = vector.shape_cast %34 : vector<8x96xbf16> to vector<1x8x96xbf16>
    tpu.vector_store %arg7[%c0_15, %c0_16, %c0_17], %37 {strides = array<i32>} : memref<1x8x96xbf16, #tpu.memory_space<vmem>>, vector<1x8x96xbf16>,
    return
  }
  func.func @transform_0(%arg0: i32, %arg1: i32) -> (i32, i32, i32) {
    %c0_i32 = arith.constant 0 : i32
    %c0_i32_0 = arith.constant 0 : i32
    return %arg0, %arg1, %c0_i32 : i32, i32, i32
  }
  func.func @transform_1(%arg0: i32, %arg1: i32) -> (i32, i32) {
    %c0_i32 = arith.constant 0 : i32
    %c0_i32_0 = arith.constant 0 : i32
    %c0_i32_1 = arith.constant 0 : i32
    return %c0_i32, %c0_i32_0 : i32, i32
  }
  func.func @transform_2(%arg0: i32, %arg1: i32) -> (i32, i32) {
    %c0_i32 = arith.constant 0 : i32
    %c0_i32_0 = arith.constant 0 : i32
    %c0_i32_1 = arith.constant 0 : i32
    return %c0_i32, %c0_i32_0 : i32, i32
  }
  func.func @transform_3(%arg0: i32, %arg1: i32) -> (i32, i32) {
    %c0_i32 = arith.constant 0 : i32
    %c0_i32_0 = arith.constant 0 : i32
    %c0_i32_1 = arith.constant 0 : i32
    return %c0_i32, %c0_i32_0 : i32, i32
  }
  func.func @transform_4(%arg0: i32, %arg1: i32) -> (i32, i32) {
    %c0_i32 = arith.constant 0 : i32
    %c0_i32_0 = arith.constant 0 : i32
    %c0_i32_1 = arith.constant 0 : i32
    return %c0_i32, %c0_i32_0 : i32, i32
  }
  func.func @transform_5(%arg0: i32, %arg1: i32) -> (i32, i32, i32) {
    %c0_i32 = arith.constant 0 : i32
    %c0_i32_0 = arith.constant 0 : i32
    return %arg0, %arg1, %c0_i32 : i32, i32, i32
  }
}

module attributes {stable_mosaic.version = 11 : i64} {
  func.func @_ln_qkv_kernel(%arg0: i32, %arg1: i32, %arg2: memref<1x8x32xf32, #tpu.memory_space<vmem>>, %arg3: memref<1x32xf32, #tpu.memory_space<vmem>>, %arg4: memref<1x32xf32, #tpu.memory_space<vmem>>, %arg5: memref<32x96xbf16, #tpu.memory_space<vmem>>, %arg6: memref<1x96xf32, #tpu.memory_space<vmem>>, %arg7: memref<1x8x96xbf16, #tpu.memory_space<vmem>>) attributes {dimension_semantics = [#tpu.dimension_semantics<parallel>, #tpu.dimension_semantics<parallel>], iteration_bounds = array<i64: 2, 1>, scalar_prefetch = 0 : i64, scratch_operands = 0 : i64, tpu.core_type = #tpu.core_type<tc>, window_params = [{transform_indices = @transform_0, window_bounds = array<i64: 1, 8, 32>}, {pipeline_mode = #tpu.pipeline_mode<synchronous>, transform_indices = @transform_1, window_bounds = array<i64: 1, 32>}, {pipeline_mode = #tpu.pipeline_mode<synchronous>, transform_indices = @transform_2, window_bounds = array<i64: 1, 32>}, {pipeline_mode = #tpu.pipeline_mode<synchronous>, transform_indices = @transform_3, window_bounds = array<i64: 32, 96>}, {pipeline_mode = #tpu.pipeline_mode<synchronous>, transform_indices = @transform_4, window_bounds = array<i64: 1, 96>}, {transform_indices = @transform_5, window_bounds = array<i64: 1, 8, 96>}]} {
    %c0 = arith.constant 0 : index
    %c0_0 = arith.constant 0 : index
    %c0_1 = arith.constant 0 : index
    %0 = vector.load %arg2[%c0, %c0_0, %c0_1] : memref<1x8x32xf32, #tpu.memory_space<vmem>>, vector<1x8x32xf32>
    %1 = vector.shape_cast %0 : vector<1x8x32xf32> to vector<8x32xf32>
    %c0_2 = arith.constant 0 : index
    %c0_3 = arith.constant 0 : index
    %2 = vector.load %arg3[%c0_2, %c0_3] : memref<1x32xf32, #tpu.memory_space<vmem>>, vector<1x32xf32>
    %3 = vector.shape_cast %2 : vector<1x32xf32> to vector<32xf32>
    %c0_4 = arith.constant 0 : index
    %c0_5 = arith.constant 0 : index
    %4 = vector.load %arg4[%c0_4, %c0_5] : memref<1x32xf32, #tpu.memory_space<vmem>>, vector<1x32xf32>
    %5 = vector.shape_cast %4 : vector<1x32xf32> to vector<32xf32>
    %cst = arith.constant dense<0.000000e+00> : vector<8xf32>
    %6 = vector.multi_reduction <add>, %1, %cst [1] : vector<8x32xf32> to vector<8xf32>
    %7 = vector.shape_cast %6 : vector<8xf32> to vector<8x1xf32>
    %cst_6 = arith.constant 3.200000e+01 : f32
    %8 = vector.broadcast %cst_6 : f32 to vector<8x1xf32>
    %9 = arith.divf %7, %8 : vector<8x1xf32>
    %10 = vector.broadcast %9 : vector<8x1xf32> to vector<8x32xf32>
    %11 = arith.subf %1, %10 : vector<8x32xf32>
    %12 = arith.mulf %11, %11 : vector<8x32xf32>
    %cst_7 = arith.constant dense<0.000000e+00> : vector<8xf32>
    %13 = vector.multi_reduction <add>, %12, %cst_7 [1] : vector<8x32xf32> to vector<8xf32>
    %14 = vector.shape_cast %13 : vector<8xf32> to vector<8x1xf32>
    %cst_8 = arith.constant 3.200000e+01 : f32
    %15 = vector.broadcast %cst_8 : f32 to vector<8x1xf32>
    %16 = arith.divf %14, %15 : vector<8x1xf32>
    %cst_9 = arith.constant 9.99999974E-6 : f32
    %17 = vector.broadcast %cst_9 : f32 to vector<8x1xf32>
    %18 = arith.addf %16, %17 : vector<8x1xf32>
    %19 = math.rsqrt %18 : vector<8x1xf32>
    %20 = vector.broadcast %19 : vector<8x1xf32> to vector<8x32xf32>
    %21 = arith.mulf %11, %20 : vector<8x32xf32>
    %22 = vector.shape_cast %3 : vector<32xf32> to vector<1x32xf32>
    %23 = vector.broadcast %22 : vector<1x32xf32> to vector<8x32xf32>
    %24 = arith.mulf %21, %23 : vector<8x32xf32>
    %25 = vector.shape_cast %5 : vector<32xf32> to vector<1x32xf32>
    %26 = vector.broadcast %25 : vector<1x32xf32> to vector<8x32xf32>
    %27 = arith.addf %24, %26 : vector<8x32xf32>
    %28 = arith.truncf %27 : vector<8x32xf32> to vector<8x32xbf16>
    %c0_10 = arith.constant 0 : index
    %c0_11 = arith.constant 0 : index
    %29 = vector.load %arg5[%c0_10, %c0_11] : memref<32x96xbf16, #tpu.memory_space<vmem>>, vector<32x96xbf16>
    %cst_12 = arith.constant dense<0.000000e+00> : vector<8x96xf32>
    %30 = tpu.matmul %28, %29, %cst_12 {dimension_numbers = #tpu.dot_dimension_numbers<[1], [0], [0], [1], [0, 0, 1, 1], [], []>} : vector<8x32xbf16>, vector<32x96xbf16>, vector<8x96xf32> -> vector<8x96xf32>
    %c0_13 = arith.constant 0 : index
    %c0_14 = arith.constant 0 : index
    %31 = vector.load %arg6[%c0_13, %c0_14] : memref<1x96xf32, #tpu.memory_space<vmem>>, vector<1x96xf32>
    %32 = vector.broadcast %31 : vector<1x96xf32> to vector<8x96xf32>
    %33 = arith.addf %30, %32 : vector<8x96xf32>
    %34 = arith.truncf %33 : vector<8x96xf32> to vector<8x96xbf16>
    %c0_15 = arith.constant 0 : index
    %c0_16 = arith.constant 0 : index
    %c0_17 = arith.constant 0 : index
    %35 = vector.load %arg7[%c0_15, %c0_16, %c0_17] : memref<1x8x96xbf16, #tpu.memory_space<vmem>>, vector<1x8x96xbf16>
    %36 = vector.shape_cast %35 : vector<1x8x96xbf16> to vector<8x96xbf16>
    %37 = vector.shape_cast %34 : vector<8x96xbf16> to vector<1x8x96xbf16>
    tpu.vector_store %arg7[%c0_15, %c0_16, %c0_17], %37 {strides = array<i32>} : memref<1x8x96xbf16, #tpu.memory_space<vmem>>, vector<1x8x96xbf16>,
    return
  }
  func.func @transform_0(%arg0: i32, %arg1: i32) -> (i32, i32, i32) {
    %c0_i32 = arith.constant 0 : i32
    %c0_i32_0 = arith.constant 0 : i32
    return %arg0, %arg1, %c0_i32 : i32, i32, i32
  }
  func.func @transform_1(%arg0: i32, %arg1: i32) -> (i32, i32) {
    %c0_i32 = arith.constant 0 : i32
    %c0_i32_0 = arith.constant 0 : i32
    %c0_i32_1 = arith.constant 0 : i32
    return %c0_i32, %c0_i32_0 : i32, i32
  }
  func.func @transform_2(%arg0: i32, %arg1: i32) -> (i32, i32) {
    %c0_i32 = arith.constant 0 : i32
    %c0_i32_0 = arith.constant 0 : i32
    %c0_i32_1 = arith.constant 0 : i32
    return %c0_i32, %c0_i32_0 : i32, i32
  }
  func.func @transform_3(%arg0: i32, %arg1: i32) -> (i32, i32) {
    %c0_i32 = arith.constant 0 : i32
    %c0_i32_0 = arith.constant 0 : i32
    %c0_i32_1 = arith.constant 0 : i32
    return %c0_i32, %c0_i32_0 : i32, i32
  }
  func.func @transform_4(%arg0: i32, %arg1: i32) -> (i32, i32) {
    %c0_i32 = arith.constant 0 : i32
    %c0_i32_0 = arith.constant 0 : i32
    %c0_i32_1 = arith.constant 0 : i32
    return %c0_i32, %c0_i32_0 : i32, i32
  }
  func.func @transform_5(%arg0: i32, %arg1: i32) -> (i32, i32, i32) {
    %c0_i32 = arith.constant 0 : i32
    %c0_i32_0 = arith.constant 0 : i32
    return %arg0, %arg1, %c0_i32 : i32, i32, i32
  }
}

</mosaic_0001>

<bundles_post_ra>
// kernel: tpu_custom_call.1
= control target key start
LH: loop header
LB: loop body
LE: loop exit
PB: predicated region body
PF: predicated region fallthrough
CT: control target
= control target key end

     0   :  { %s962_s0 = inlined_call_operand.hbm [shape: f32[2,8,32], index: 0, kind: input, shape index: {}]   ;;  %s963_s1 = inlined_call_operand.vmem [shape: f32[1,32], index: 1, kind: input, shape index: {}]   ;;  %s964_s2 = inlined_call_operand.vmem [shape: f32[1,32], index: 2, kind: input, shape index: {}]   ;;  %s965_s3 = inlined_call_operand.hbm [shape: bf16[32,96], index: 3, kind: input, shape index: {}]   ;;  %s966_s4 = inlined_call_operand.vmem [shape: f32[1,96], index: 4, kind: input, shape index: {}]   ;;  %s967_s5 = inlined_call_operand.hbm [shape: bf16[2,8,96], index: 5, kind: output, shape index: {}]  }
   0x1   :  { %970 = sst [smem:[#allocation12_spill]] %s965_s3 }
   0x2   :  { %10 = vsyncpa [#allocation3], 0 }
   0x3   :  { %12 = vsyncpa [#allocation3 + $0x1], 0 }
   0x4   :  { %13 = vsyncpa [#allocation6], 0 }
   0x5   :  { %14 = vsyncpa [#allocation4], 0 }
   0x6   :  { %16 = vsyncpa [#allocation4 + $0x1], 0  ;;  %s770_s18 = smov 0   ;;  %s772_s19 = smov 0  }
   0x7   :  { %s774_s20 = smov 0   ;;  %s776_s21 = smov 0  }
   0x8   :  { %s778_s22 = smov 0   ;;  %s780_s23 = smov 0  }
   0x9 LB: > { %s480_s24 = sadd.s32 4294967295, %s731_s23   ;;  %s481_s25 = sadd.s32 4294967294, %s731_s23   ;;  %s731_s23 = sphi %s780_s23, %s22_s23   ;;  %s727_s22 = sphi %s778_s22, %s990_s22   ;;  %s723_s21 = sphi %s776_s21, %s989_s21   ;;  %s719_s20 = sphi %s774_s20, %s988_s20   ;;  %s715_s19 = sphi %s772_s19, %s987_s19   ;;  %s711_s18 = sphi %s770_s18, %s986_s18  }
   0xa   : > { %p56_p0 = scmp.ne.s32.totalorder %s715_s19, %s711_s18  ;;  %p804_p1 = scmp.eq.s32.totalorder %s480_s24, 0 }
   0xb   : > { %p808_p2 = scmp.eq.s32.totalorder %s480_s24, 1  ;;  %p172_p3 = scmp.eq.s32.totalorder %s481_s25, 1 }
   0xc   : > { %p814_p4 = por %p804_p1, %p56_p0  ;;  %p482_p5 = scmp.ge.s32.totalorder %s731_s23, 1 }
   0xd   : > { %p819_p6 = por %p172_p3, %p56_p0  ;;  %p179_p7 = scmp.lt.s32.totalorder %s731_s23, 3 }
   0xe   : > { %s973_s28 = scalar_select %p814_p4, 1, 0 }
   0xf   : > { %s974_s29 = scalar_select %p819_p6, 1, 0 }
  0x10   : > { %p824_p8 = pnand %p482_p5, %p179_p7  ;;  %s733_s6 = smov [#allocation5]  }
  0x11   : > { %s197_s7 = sshll.u32 %s733_s6, 4  ;;  %s34_s9 = sadd.s32 1, %s727_s22  ;;  %s198_s7 = int_to_ptr.vmem [resolvable:$true] %s197_s7 }
  0x12   : > { %p520_p9 = pneg %p824_p8  ;;  %s604_s10 = scalar_lea.vmem %s198_s7, 256 }
  0x13   : > { %p605_p13 = scmp.ne.s32.totalorder %s198_s7, %s604_s10  ;;  %p612_p5 = scmp.lt.s32.totalorder %s198_s7, %s198_s7 }
  0x14   : > { %p833_p11 = pnand %p520_p9, %p804_p1  ;;  %p613_p7 = scmp.lt.s32.totalorder %s604_s10, %s604_s10 }
  0x16   : > { %p595_p12 = pneg %p833_p11  ;;  %p614_p6 = por %p613_p7, %p612_p5 }
  0x18   : > { %p607_p0 = pnand %p605_p13, %p595_p12 }
  0x1a   : > { %p608_p3 = pneg %p607_p0 }
  0x1c   : > { %p615_p4 = pnand %p614_p6, %p608_p3 }
  0x1e   : > { %618 = shalt.err (!%p615_p4)
}
  0x1f   : > { %s734_s11 = smov 64   ;;  %s735_s12 = smov 4  }
  0x20   : > { %s977_s3 = sld [smem:[#allocation12_spill]]  ;;  %p36_p6 = scmp.ge.s32.totalorder %s34_s9, 2 }
  0x21   : > { %s43_s15 = sadd.s32 1, %s719_s20  ;;  %p50_p4 = scmp.ne.s32.totalorder %s719_s20, %s715_s19 }
  0x22   : > { %p51_p9 = scmp.eq.s32.totalorder %s731_s23, 0  ;;  %s992_s9 = smov (%p36_p6, %s34_s9), 0 }
  0x23   : > { %978 = sst [smem:[#allocation11_spill]] %s992_s9  ;;  %p857_p13 = por %p808_p2, %p50_p4 }
  0x24   : > { %p851_p12 = por %p51_p9, %p50_p4  ;;  %s38_s24 = ssub.s32 %s727_s22, %s992_s9 }
  0x25   : > { %p533_p0 = scmp.lt.s32.totalorder %s731_s23, 2  ;;  %s214_s25 = sand.u32 1, %s719_s20  }
  0x26   : > { %523 = dma.hbm_to_vmem [thread:$0]  (!%p833_p11), %s977_s3, 256, %s198_s7, [#allocation6], %s734_s11, %s734_s11, %s735_s12  }
  0x27   : > { %p41_p11 = scmp.eq.s32.totalorder %s38_s24, 0  ;;  %s485_s6 = sshll.u32 %s214_s25, 3 }
  0x28   : > { %s486_s8 = sshll.u32 %s727_s22, 7  ;;  %s218_s13 = scalar_lea.vmem [#allocation2], %s485_s6 }
  0x29   : > { %s866_s7 = scalar_select %p41_p11, %s719_s20, %s43_s15  }
  0x2a   : > { %s224_s12 = scalar_lea.hbm %s962_s0, %s486_s8  ;;  %s226_s14 = sshll.u32 %s218_s13, 4  ;;  %s227_s14 = int_to_ptr.vmem [resolvable:$true] %s226_s14 }
  0x2b   : > { %p874_p2 = pnand %p533_p0, %p851_p12  ;;  %s215_s3 = scalar_lea.sflag [#allocation3], %s214_s25 }
  0x2c   : > { %s632_s24 = scalar_lea.vmem %s227_s14, 128  ;;  %s736_s15 = smov [#allocation2]  }
  0x2d   : > { %p621_p3 = pneg %p874_p2  ;;  %p633_p5 = scmp.ne.s32.totalorder %s227_s14, %s632_s24 }
  0x2e   : > { %s637_s9 = sshll.u32 %s736_s15, 4  ;;  %s638_s9 = int_to_ptr.vmem [resolvable:$false] %s637_s9 }
  0x2f   : > { %p635_p7 = pnand %p633_p5, %p621_p3  ;;  %s639_s8 = scalar_lea.vmem %s638_s9, 256 }
  0x30   : > { %p640_p4 = scmp.lt.s32.totalorder %s227_s14, %s638_s9  ;;  %p641_p9 = scmp.lt.s32.totalorder %s639_s8, %s632_s24 }
  0x31   : > { %p636_p6 = pneg %p635_p7 }
  0x32   : > { %p642_p11 = por %p641_p9, %p640_p4 }
  0x34   : > { %p643_p10 = pnand %p642_p11, %p636_p6 }
  0x36   : > { %646 = shalt.err (!%p643_p10)
}
  0x37   : > { %527 = dma.hbm_to_vmem [thread:$0]  (!%p874_p2), %s224_s12, 128, %s227_s14, %s215_s3  }
  0x38   : > { %235 = sbr.rel (%p824_p8) target bundleno = 586 (0x24a), region = 40  ;;  %s885_s16 = sand.u32 (!%p824_p8), 1, %s715_s19  }
  0x39   : > { %s488_s25 = sshll.u32 (!%p824_p8), %s885_s16, 3  ;;  %s238_s6 = scalar_lea.sflag (!%p824_p8), [#allocation3], %s885_s16 }
  0x3a   : > { %s241_s10 = scalar_lea.vmem (!%p824_p8), [#allocation2], %s488_s25  ;;  %p982_p12 = scmp.ne.s32.totalorder (!%p824_p8), %s973_s28, 0 }
  0x3d   : > { %698 = dma.done.wait (%p982_p12), %s238_s6, 128  }
  0x3e   : > { %700 = vsyncadd (%p982_p12), %s238_s6, 4294967168 }
  0x3f   : > { %702 = dma.done.wait (%p804_p1), [#allocation6], 256  }
  0x40   : > { %704 = vsyncadd (%p804_p1), [#allocation6], 4294967040  ;;  %vm276_vm0 = vcmask 261120   ;;  %v273_v0 = vld [vmem:[%s241_s10] sm:$0xff]  ;;  %v589_v7 = vld [vmem:[#allocation5 + $0x8] sm:$0xff]   ;;  %v737_v8 = vmov 0.0  }
  0x41   : > { %v277_v1 = vsel %vm276_vm0, %v273_v0, 0.0  ;;  %504 = vmatprep.subr.bf16.mxu0 %v737_v8  ;;  %vm738_vm1 = vmmov 0   ;;  %v590_v9 = vld [vmem:[#allocation5] sm:$0xff]   ;;  %v491_v14 = vld [vmem:[%s963_s1] ss:$0 sm:$0xff]  ;;  %s490_s9 = sshll.u32 %s885_s16, 2 }
  0x42   : > { %278 = vadd.xlane.f32.xlu0 %v277_v1  ;;  %508 = vmatprep.mubr.msk.bf16.mxu0 %vm738_vm1, %v737_v8  ;;  %v492_v16 = vld [vmem:[%s964_s2] ss:$0 sm:$0xff]  ;;  %s498_s13 = sshll.u32 %s723_s21, 6  ;;  %s271_s14 = scalar_lea.vmem [#allocation7], %s490_s9  ;;  %vm373_vm2 = vcmask 781312  }
  0x43   : > { %505 = vmatpush3.bf16.msra.mxu0 %v589_v7  ;;  %v493_v20 = vld [vmem:[%s966_s4] ss:$0 sm:$0xff]  ;;  %s390_s27 = sshll.u32 %s271_s14, 4  ;;  %s914_s8 = scalar_lea.hbm %s967_s5, %s498_s13  ;;  %s916_s27 = int_to_ptr.vmem [resolvable:$true] %s390_s27 }
  0x44   : > { %506 = vmatprep.subr.bf16.mxu0 %v737_v8  ;;  %s376_s21 = scalar_lea.sflag [#allocation4], %s885_s16  ;;  %s647_s25 = scalar_lea.vmem %s916_s27, 64 }
  0x45   : > { %p648_p1 = scmp.ne.s32.totalorder %s916_s27, %s647_s25  ;;  %s739_s6 = smov [#allocation7]  }
  0x46   : > { %s651_s10 = sshll.u32 %s739_s6, 4  ;;  %s652_s10 = int_to_ptr.vmem [resolvable:$false] %s651_s10 }
  0x47   : > { %507 = vmatpush3.bf16.msra.mxu0 %v590_v9  ;;  %p649_p8 = pnand %p648_p1, %p857_p13  ;;  %s653_s3 = scalar_lea.vmem %s652_s10, 128 }
  0x48   : > { %p654_p0 = scmp.lt.s32.totalorder %s916_s27, %s652_s10  ;;  %p655_p2 = scmp.lt.s32.totalorder %s653_s3, %s647_s25 }
  0x49   : > { %p650_p10 = pneg %p649_p8 }
  0x4a   : > { %p656_p3 = por %p655_p2, %p654_p0 }
  0x4c   : > { %p657_p5 = pnand %p656_p3, %p650_p10 }
  0xcb   : > { %v279_v2 = vpop.xlane.xlu0 %278 }
  0xcc   : > { %v281_v3 = vmul.f32 0.03125, %v279_v2 }
  0xce   : > { %v282_v4 = vsub.f32 %v273_v0, %v281_v3 }
  0xd0   : > { %v283_v5 = vmul.f32 %v282_v4, %v282_v4 }
  0xd2   : > { %v284_v6 = vsel %vm276_vm0, %v283_v5, 0.0 }
  0xd3   : > { %285 = vadd.xlane.f32.xlu0 %v284_v6 }
 0x15c   : > { %v286_v10 = vpop.xlane.xlu0 %285 }
 0x15d   : > { %v287_v11 = vmul.f32 0.03125, %v286_v10 }
 0x15f   : > { %v288_v12 = vadd.f32 1e-05, %v287_v11 }
 0x161   : > { %591 = vrsqrt.f32 %v288_v12 }
 0x16e   : > { %v592_v13 = vpop.eup %591 }
 0x16f   : > { %v290_v15 = vmul.f32 %v592_v13, %v282_v4 }
 0x171   : > { %v297_v17 = vmul.f32 %v491_v14, %v290_v15 }
 0x173   : > { %v304_v18 = vadd.f32 %v492_v16, %v297_v17 }
 0x175   : > { %v305_v19 = vpack.c.bf16 %v304_v18, %v304_v18 }
 0x177   : > { %509 = vmatmul.mubr.msk.bf16.vlgmr.msra.gmra.mxu0 %vm276_vm0, %v305_v19 }
 0x237   : > { %v366_v21 = vpop.f32.mrf.mxu0 }
 0x238   : > { %v367_v22 = vadd.f32 %v493_v20, %v366_v21 }
 0x239   : > { %v510_v23 = vpop.f32.mrf.mxu0 }
 0x23a   : > { %v372_v24 = vpack.c.bf16 %v367_v22, %v367_v22 }
 0x23b   : > { %v369_v25 = vpop.f32.mrf.mxu0 }
 0x23c   : > { %374 = vst.msk [vmem:[%s271_s14] sm:$0xf] %vm373_vm2, %v372_v24 }
 0x23d   : > { %v511_v26 = vpop.f32.mrf.mxu0 }
 0x23e   : > { %660 = shalt.err (!%p657_p5)
}
 0x23f   : > { %s661_s26 = scalar_lea.hbm %s914_s8, 64  ;;  %s665_s30 = scalar_lea.hbm %s967_s5, 128 }
 0x240   : > { %p662_p7 = scmp.ne.s32.totalorder %s914_s8, %s661_s26  ;;  %p666_p9 = scmp.lt.s32.totalorder %s914_s8, %s967_s5 }
 0x241   : > { %p667_p11 = scmp.lt.s32.totalorder %s665_s30, %s661_s26 }
 0x242   : > { %p663_p6 = pnand %p662_p7, %p857_p13 }
 0x243   : > { %p668_p12 = por %p667_p11, %p666_p9 }
 0x244   : > { %p664_p4 = pneg %p663_p6 }
 0x246   : > { %p669_p1 = pnand %p668_p12, %p664_p4 }
 0x248   : > { %672 = shalt.err (!%p669_p1)
}
 0x249   : > { %518 = dma.vmem_to_hbm [thread:$0]  (%p857_p13), %s916_s27, 64, %s914_s8, %s376_s21  }
 0x24a PF: > { %s402_s12 = sand.u32 1, %s711_s18   ;;  %p983_p8 = scmp.ne.s32.totalorder %s974_s29, 0 }
 0x24b   : > { %p984_p10 = scmp.ge.s32.totalorder %s731_s23, 2  ;;  %s403_s13 = scalar_lea.sflag [#allocation4], %s402_s12 }
 0x24d   : > { %p529_p0 = pnand %p984_p10, %p983_p8 }
 0x24f   : > { %p530_p2 = pneg %p529_p0 }
 0x251   : > { %706 = dma.done.wait (%p530_p2), %s403_s13, 64  }
 0x252   : > { %708 = vsyncadd (%p530_p2), %s403_s13, 4294967232  ;;  %s22_s23 = sadd.s32 1, %s731_s23   ;;  %s985_s17 = sld [smem:[#allocation11_spill]] }
 0x253   : > { %p19_p3 = scmp.ge.s32.totalorder %s22_s23, 4   ;;  %s986_s18 = smov %s715_s19 }
 0x254   : > { %s987_s19 = smov %s719_s20  ;;  %s988_s20 = smov %s866_s7 }
 0x255   : > { %s989_s21 = smov %s727_s22  ;;  %21 = sbr.rel (!%p19_p3) target bundleno = 9 (0x9), region = 89 }
 0x258   : > { %s990_s22 = smov %s985_s17 }
 0x25a   :  { %408 = vsyncpa [#allocation3], 1 }
 0x25b   :  { %410 = vsyncpa [#allocation3 + $0x1], 1 }
 0x25c   :  { %411 = vsyncpa [#allocation6], 1 }
 0x25d   :  { %412 = vsyncpa [#allocation4], 1 }
 0x25e   :  { %414 = vsyncpa [#allocation4 + $0x1], 1 }

// kernel: tpu_custom_call.1
= control target key start
LH: loop header
LB: loop body
LE: loop exit
PB: predicated region body
PF: predicated region fallthrough
CT: control target
= control target key end

     0   :  { %s962_s0 = inlined_call_operand.hbm [shape: f32[2,8,32], index: 0, kind: input, shape index: {}]   ;;  %s963_s1 = inlined_call_operand.vmem [shape: f32[1,32], index: 1, kind: input, shape index: {}]   ;;  %s964_s2 = inlined_call_operand.vmem [shape: f32[1,32], index: 2, kind: input, shape index: {}]   ;;  %s965_s3 = inlined_call_operand.hbm [shape: bf16[32,96], index: 3, kind: input, shape index: {}]   ;;  %s966_s4 = inlined_call_operand.vmem [shape: f32[1,96], index: 4, kind: input, shape index: {}]   ;;  %s967_s5 = inlined_call_operand.hbm [shape: bf16[2,8,96], index: 5, kind: output, shape index: {}]  }
   0x1   :  { %970 = sst [smem:[#allocation12_spill]] %s965_s3 }
   0x2   :  { %10 = vsyncpa [#allocation3], 0 }
   0x3   :  { %12 = vsyncpa [#allocation3 + $0x1], 0 }
   0x4   :  { %13 = vsyncpa [#allocation6], 0 }
   0x5   :  { %14 = vsyncpa [#allocation4], 0 }
   0x6   :  { %16 = vsyncpa [#allocation4 + $0x1], 0  ;;  %s770_s18 = smov 0   ;;  %s772_s19 = smov 0  }
   0x7   :  { %s774_s20 = smov 0   ;;  %s776_s21 = smov 0  }
   0x8   :  { %s778_s22 = smov 0   ;;  %s780_s23 = smov 0  }
   0x9 LB: > { %s480_s24 = sadd.s32 4294967295, %s731_s23   ;;  %s481_s25 = sadd.s32 4294967294, %s731_s23   ;;  %s731_s23 = sphi %s780_s23, %s22_s23   ;;  %s727_s22 = sphi %s778_s22, %s990_s22   ;;  %s723_s21 = sphi %s776_s21, %s989_s21   ;;  %s719_s20 = sphi %s774_s20, %s988_s20   ;;  %s715_s19 = sphi %s772_s19, %s987_s19   ;;  %s711_s18 = sphi %s770_s18, %s986_s18  }
   0xa   : > { %p56_p0 = scmp.ne.s32.totalorder %s715_s19, %s711_s18  ;;  %p804_p1 = scmp.eq.s32.totalorder %s480_s24, 0 }
   0xb   : > { %p808_p2 = scmp.eq.s32.totalorder %s480_s24, 1  ;;  %p172_p3 = scmp.eq.s32.totalorder %s481_s25, 1 }
   0xc   : > { %p814_p4 = por %p804_p1, %p56_p0  ;;  %p482_p5 = scmp.ge.s32.totalorder %s731_s23, 1 }
   0xd   : > { %p819_p6 = por %p172_p3, %p56_p0  ;;  %p179_p7 = scmp.lt.s32.totalorder %s731_s23, 3 }
   0xe   : > { %s973_s28 = scalar_select %p814_p4, 1, 0 }
   0xf   : > { %s974_s29 = scalar_select %p819_p6, 1, 0 }
  0x10   : > { %p824_p8 = pnand %p482_p5, %p179_p7  ;;  %s733_s6 = smov [#allocation5]  }
  0x11   : > { %s197_s7 = sshll.u32 %s733_s6, 4  ;;  %s34_s9 = sadd.s32 1, %s727_s22  ;;  %s198_s7 = int_to_ptr.vmem [resolvable:$true] %s197_s7 }
  0x12   : > { %p520_p9 = pneg %p824_p8  ;;  %s604_s10 = scalar_lea.vmem %s198_s7, 256 }
  0x13   : > { %p605_p13 = scmp.ne.s32.totalorder %s198_s7, %s604_s10  ;;  %p612_p5 = scmp.lt.s32.totalorder %s198_s7, %s198_s7 }
  0x14   : > { %p833_p11 = pnand %p520_p9, %p804_p1  ;;  %p613_p7 = scmp.lt.s32.totalorder %s604_s10, %s604_s10 }
  0x16   : > { %p595_p12 = pneg %p833_p11  ;;  %p614_p6 = por %p613_p7, %p612_p5 }
  0x18   : > { %p607_p0 = pnand %p605_p13, %p595_p12 }
  0x1a   : > { %p608_p3 = pneg %p607_p0 }
  0x1c   : > { %p615_p4 = pnand %p614_p6, %p608_p3 }
  0x1e   : > { %618 = shalt.err (!%p615_p4)
}
  0x1f   : > { %s734_s11 = smov 64   ;;  %s735_s12 = smov 4  }
  0x20   : > { %s977_s3 = sld [smem:[#allocation12_spill]]  ;;  %p36_p6 = scmp.ge.s32.totalorder %s34_s9, 2 }
  0x21   : > { %s43_s15 = sadd.s32 1, %s719_s20  ;;  %p50_p4 = scmp.ne.s32.totalorder %s719_s20, %s715_s19 }
  0x22   : > { %p51_p9 = scmp.eq.s32.totalorder %s731_s23, 0  ;;  %s992_s9 = smov (%p36_p6, %s34_s9), 0 }
  0x23   : > { %978 = sst [smem:[#allocation11_spill]] %s992_s9  ;;  %p857_p13 = por %p808_p2, %p50_p4 }
  0x24   : > { %p851_p12 = por %p51_p9, %p50_p4  ;;  %s38_s24 = ssub.s32 %s727_s22, %s992_s9 }
  0x25   : > { %p533_p0 = scmp.lt.s32.totalorder %s731_s23, 2  ;;  %s214_s25 = sand.u32 1, %s719_s20  }
  0x26   : > { %523 = dma.hbm_to_vmem [thread:$0]  (!%p833_p11), %s977_s3, 256, %s198_s7, [#allocation6], %s734_s11, %s734_s11, %s735_s12  }
  0x27   : > { %p41_p11 = scmp.eq.s32.totalorder %s38_s24, 0  ;;  %s485_s6 = sshll.u32 %s214_s25, 3 }
  0x28   : > { %s486_s8 = sshll.u32 %s727_s22, 7  ;;  %s218_s13 = scalar_lea.vmem [#allocation2], %s485_s6 }
  0x29   : > { %s866_s7 = scalar_select %p41_p11, %s719_s20, %s43_s15  }
  0x2a   : > { %s224_s12 = scalar_lea.hbm %s962_s0, %s486_s8  ;;  %s226_s14 = sshll.u32 %s218_s13, 4  ;;  %s227_s14 = int_to_ptr.vmem [resolvable:$true] %s226_s14 }
  0x2b   : > { %p874_p2 = pnand %p533_p0, %p851_p12  ;;  %s215_s3 = scalar_lea.sflag [#allocation3], %s214_s25 }
  0x2c   : > { %s632_s24 = scalar_lea.vmem %s227_s14, 128  ;;  %s736_s15 = smov [#allocation2]  }
  0x2d   : > { %p621_p3 = pneg %p874_p2  ;;  %p633_p5 = scmp.ne.s32.totalorder %s227_s14, %s632_s24 }
  0x2e   : > { %s637_s9 = sshll.u32 %s736_s15, 4  ;;  %s638_s9 = int_to_ptr.vmem [resolvable:$false] %s637_s9 }
  0x2f   : > { %p635_p7 = pnand %p633_p5, %p621_p3  ;;  %s639_s8 = scalar_lea.vmem %s638_s9, 256 }
  0x30   : > { %p640_p4 = scmp.lt.s32.totalorder %s227_s14, %s638_s9  ;;  %p641_p9 = scmp.lt.s32.totalorder %s639_s8, %s632_s24 }
  0x31   : > { %p636_p6 = pneg %p635_p7 }
  0x32   : > { %p642_p11 = por %p641_p9, %p640_p4 }
  0x34   : > { %p643_p10 = pnand %p642_p11, %p636_p6 }
  0x36   : > { %646 = shalt.err (!%p643_p10)
}
  0x37   : > { %527 = dma.hbm_to_vmem [thread:$0]  (!%p874_p2), %s224_s12, 128, %s227_s14, %s215_s3  }
  0x38   : > { %235 = sbr.rel (%p824_p8) target bundleno = 586 (0x24a), region = 40  ;;  %s885_s16 = sand.u32 (!%p824_p8), 1, %s715_s19  }
  0x39   : > { %s488_s25 = sshll.u32 (!%p824_p8), %s885_s16, 3  ;;  %s238_s6 = scalar_lea.sflag (!%p824_p8), [#allocation3], %s885_s16 }
  0x3a   : > { %s241_s10 = scalar_lea.vmem (!%p824_p8), [#allocation2], %s488_s25  ;;  %p982_p12 = scmp.ne.s32.totalorder (!%p824_p8), %s973_s28, 0 }
  0x3d   : > { %698 = dma.done.wait (%p982_p12), %s238_s6, 128  }
  0x3e   : > { %700 = vsyncadd (%p982_p12), %s238_s6, 4294967168 }
  0x3f   : > { %702 = dma.done.wait (%p804_p1), [#allocation6], 256  }
  0x40   : > { %704 = vsyncadd (%p804_p1), [#allocation6], 4294967040  ;;  %vm276_vm0 = vcmask 261120   ;;  %v273_v0 = vld [vmem:[%s241_s10] sm:$0xff]  ;;  %v589_v7 = vld [vmem:[#allocation5 + $0x8] sm:$0xff]   ;;  %v737_v8 = vmov 0.0  }
  0x41   : > { %v277_v1 = vsel %vm276_vm0, %v273_v0, 0.0  ;;  %504 = vmatprep.subr.bf16.mxu0 %v737_v8  ;;  %vm738_vm1 = vmmov 0   ;;  %v590_v9 = vld [vmem:[#allocation5] sm:$0xff]   ;;  %v491_v14 = vld [vmem:[%s963_s1] ss:$0 sm:$0xff]  ;;  %s490_s9 = sshll.u32 %s885_s16, 2 }
  0x42   : > { %278 = vadd.xlane.f32.xlu0 %v277_v1  ;;  %508 = vmatprep.mubr.msk.bf16.mxu0 %vm738_vm1, %v737_v8  ;;  %v492_v16 = vld [vmem:[%s964_s2] ss:$0 sm:$0xff]  ;;  %s498_s13 = sshll.u32 %s723_s21, 6  ;;  %s271_s14 = scalar_lea.vmem [#allocation7], %s490_s9  ;;  %vm373_vm2 = vcmask 781312  }
  0x43   : > { %505 = vmatpush3.bf16.msra.mxu0 %v589_v7  ;;  %v493_v20 = vld [vmem:[%s966_s4] ss:$0 sm:$0xff]  ;;  %s390_s27 = sshll.u32 %s271_s14, 4  ;;  %s914_s8 = scalar_lea.hbm %s967_s5, %s498_s13  ;;  %s916_s27 = int_to_ptr.vmem [resolvable:$true] %s390_s27 }
  0x44   : > { %506 = vmatprep.subr.bf16.mxu0 %v737_v8  ;;  %s376_s21 = scalar_lea.sflag [#allocation4], %s885_s16  ;;  %s647_s25 = scalar_lea.vmem %s916_s27, 64 }
  0x45   : > { %p648_p1 = scmp.ne.s32.totalorder %s916_s27, %s647_s25  ;;  %s739_s6 = smov [#allocation7]  }
  0x46   : > { %s651_s10 = sshll.u32 %s739_s6, 4  ;;  %s652_s10 = int_to_ptr.vmem [resolvable:$false] %s651_s10 }
  0x47   : > { %507 = vmatpush3.bf16.msra.mxu0 %v590_v9  ;;  %p649_p8 = pnand %p648_p1, %p857_p13  ;;  %s653_s3 = scalar_lea.vmem %s652_s10, 128 }
  0x48   : > { %p654_p0 = scmp.lt.s32.totalorder %s916_s27, %s652_s10  ;;  %p655_p2 = scmp.lt.s32.totalorder %s653_s3, %s647_s25 }
  0x49   : > { %p650_p10 = pneg %p649_p8 }
  0x4a   : > { %p656_p3 = por %p655_p2, %p654_p0 }
  0x4c   : > { %p657_p5 = pnand %p656_p3, %p650_p10 }
  0xcb   : > { %v279_v2 = vpop.xlane.xlu0 %278 }
  0xcc   : > { %v281_v3 = vmul.f32 0.03125, %v279_v2 }
  0xce   : > { %v282_v4 = vsub.f32 %v273_v0, %v281_v3 }
  0xd0   : > { %v283_v5 = vmul.f32 %v282_v4, %v282_v4 }
  0xd2   : > { %v284_v6 = vsel %vm276_vm0, %v283_v5, 0.0 }
  0xd3   : > { %285 = vadd.xlane.f32.xlu0 %v284_v6 }
 0x15c   : > { %v286_v10 = vpop.xlane.xlu0 %285 }
 0x15d   : > { %v287_v11 = vmul.f32 0.03125, %v286_v10 }
 0x15f   : > { %v288_v12 = vadd.f32 1e-05, %v287_v11 }
 0x161   : > { %591 = vrsqrt.f32 %v288_v12 }
 0x16e   : > { %v592_v13 = vpop.eup %591 }
 0x16f   : > { %v290_v15 = vmul.f32 %v592_v13, %v282_v4 }
 0x171   : > { %v297_v17 = vmul.f32 %v491_v14, %v290_v15 }
 0x173   : > { %v304_v18 = vadd.f32 %v492_v16, %v297_v17 }
 0x175   : > { %v305_v19 = vpack.c.bf16 %v304_v18, %v304_v18 }
 0x177   : > { %509 = vmatmul.mubr.msk.bf16.vlgmr.msra.gmra.mxu0 %vm276_vm0, %v305_v19 }
 0x237   : > { %v366_v21 = vpop.f32.mrf.mxu0 }
 0x238   : > { %v367_v22 = vadd.f32 %v493_v20, %v366_v21 }
 0x239   : > { %v510_v23 = vpop.f32.mrf.mxu0 }
 0x23a   : > { %v372_v24 = vpack.c.bf16 %v367_v22, %v367_v22 }
 0x23b   : > { %v369_v25 = vpop.f32.mrf.mxu0 }
 0x23c   : > { %374 = vst.msk [vmem:[%s271_s14] sm:$0xf] %vm373_vm2, %v372_v24 }
 0x23d   : > { %v511_v26 = vpop.f32.mrf.mxu0 }
 0x23e   : > { %660 = shalt.err (!%p657_p5)
}
 0x23f   : > { %s661_s26 = scalar_lea.hbm %s914_s8, 64  ;;  %s665_s30 = scalar_lea.hbm %s967_s5, 128 }
 0x240   : > { %p662_p7 = scmp.ne.s32.totalorder %s914_s8, %s661_s26  ;;  %p666_p9 = scmp.lt.s32.totalorder %s914_s8, %s967_s5 }
 0x241   : > { %p667_p11 = scmp.lt.s32.totalorder %s665_s30, %s661_s26 }
 0x242   : > { %p663_p6 = pnand %p662_p7, %p857_p13 }
 0x243   : > { %p668_p12 = por %p667_p11, %p666_p9 }
 0x244   : > { %p664_p4 = pneg %p663_p6 }
 0x246   : > { %p669_p1 = pnand %p668_p12, %p664_p4 }
 0x248   : > { %672 = shalt.err (!%p669_p1)
}
 0x249   : > { %518 = dma.vmem_to_hbm [thread:$0]  (%p857_p13), %s916_s27, 64, %s914_s8, %s376_s21  }
 0x24a PF: > { %s402_s12 = sand.u32 1, %s711_s18   ;;  %p983_p8 = scmp.ne.s32.totalorder %s974_s29, 0 }
 0x24b   : > { %p984_p10 = scmp.ge.s32.totalorder %s731_s23, 2  ;;  %s403_s13 = scalar_lea.sflag [#allocation4], %s402_s12 }
 0x24d   : > { %p529_p0 = pnand %p984_p10, %p983_p8 }
 0x24f   : > { %p530_p2 = pneg %p529_p0 }
 0x251   : > { %706 = dma.done.wait (%p530_p2), %s403_s13, 64  }
 0x252   : > { %708 = vsyncadd (%p530_p2), %s403_s13, 4294967232  ;;  %s22_s23 = sadd.s32 1, %s731_s23   ;;  %s985_s17 = sld [smem:[#allocation11_spill]] }
 0x253   : > { %p19_p3 = scmp.ge.s32.totalorder %s22_s23, 4   ;;  %s986_s18 = smov %s715_s19 }
 0x254   : > { %s987_s19 = smov %s719_s20  ;;  %s988_s20 = smov %s866_s7 }
 0x255   : > { %s989_s21 = smov %s727_s22  ;;  %21 = sbr.rel (!%p19_p3) target bundleno = 9 (0x9), region = 89 }
 0x258   : > { %s990_s22 = smov %s985_s17 }
 0x25a   :  { %408 = vsyncpa [#allocation3], 1 }
 0x25b   :  { %410 = vsyncpa [#allocation3 + $0x1], 1 }
 0x25c   :  { %411 = vsyncpa [#allocation6], 1 }
 0x25d   :  { %412 = vsyncpa [#allocation4], 1 }
 0x25e   :  { %414 = vsyncpa [#allocation4 + $0x1], 1 }

</bundles_post_ra>
